<compile_context>
chip_gen: v7x
topology: tpu7x:2x2x1
jax: 0.10.0
libtpu: 0.0.40
codegen_flags: <defaults>
</compile_context>

<pallas_src>
import jax
import jax.numpy as jnp
from jax.experimental import pallas as pl
from jax.experimental.pallas import tpu as pltpu

EPS = 1e-5


def _make_kernel(cin_list, H, W, images_per_step):
    """Build the fused pad+conv+instancenorm+relu kernel (static config baked in)."""
    Wp = W + 2
    HW = H * W
    L = H * Wp - 2                      # padded-flat span covering every output pixel
    n_inputs = len(cin_list)
    cin_total = sum(cin_list)
    cin_off = [sum(cin_list[:i]) for i in range(n_inputs)]
    tap_starts = [dy * Wp + dx for dy in range(3) for dx in range(3)]
    inv_n = 1.0 / HW

    def kernel(*refs):
        w_ref = refs[0]                       # (Cout, 9*Cin_total) tap-major, cin inner
        mask_ref = refs[1]                    # (1, L) f32, 1.0 on valid (interior) cols
        x_refs = refs[2:2 + n_inputs]         # each (Nb, Cin_i, (H+2)*(W+2))
        o_ref = refs[2 + n_inputs]            # (Nb, Cout, L)

        w = w_ref[...]
        mask = mask_ref[...]
        cout = w.shape[0]

        for b in range(images_per_step):
            acc = jnp.zeros((cout, L), jnp.float32)
            # 3x3 conv as 9 shifted matmuls per input tensor (shift-and-matmul):
            # output flat position q = i*Wp + j reads padded flat position q + s_t.
            for i in range(n_inputs):
                xflat = x_refs[i][b]                      # (Cin_i, (H+2)*(W+2))
                c0, ci = cin_off[i], cin_list[i]
                for t, s in enumerate(tap_starts):
                    w_t = w[:, t * cin_total + c0: t * cin_total + c0 + ci]
                    acc = acc + jnp.dot(
                        w_t, xflat[:, s:s + L],
                        preferred_element_type=jnp.float32)

            # InstanceNorm2d(affine=False): masked single-pass stats over the HW
            # valid lane positions (global per-image stats; biased var; eps=1e-5).
            am = acc * mask
            s1 = jnp.sum(am, axis=1, keepdims=True)           # (Cout, 1)
            s2 = jnp.sum(am * acc, axis=1, keepdims=True)     # sum of mask*acc^2
            mean = s1 * inv_n
            var = jnp.maximum(s2 * inv_n - mean * mean, 0.0)  # clamp: no NaN via rsqrt
            y = (acc - mean) * jax.lax.rsqrt(var + EPS)

            # ReLU
            o_ref[b] = jnp.maximum(y, 0.0).astype(o_ref.dtype)

    return kernel


def dense_layer_forward(inputs, weight, bias, *,
                        compute_dtype=jnp.bfloat16, images_per_step=1):
    """inputs: list of NCHW arrays; weight: (Cout, sum(Cin_i), 3, 3); bias: (Cout,).

    `bias` is accepted for API parity with the PyTorch module but unused:
    InstanceNorm2d(affine=False) subtracts the per-channel mean over the full
    HW extent of each image, which cancels a constant per-channel bias exactly
    (the reference keeps the bias and outputs still match).
    """
    del bias  # cancelled exactly by the instance-norm mean subtraction (see header)

    N, _, H, W = inputs[0].shape
    for a in inputs:
        assert a.shape[0] == N and a.shape[2:] == (H, W)
    cin_list = [int(a.shape[1]) for a in inputs]
    cin_total = sum(cin_list)
    Cout = int(weight.shape[0])
    assert weight.shape == (Cout, cin_total, 3, 3)
    assert N % images_per_step == 0

    Hp, Wp = H + 2, W + 2
    Lfull = Hp * Wp
    L = H * Wp - 2

    # Per-input ReflectionPad2d(1) + flatten spatial + cast for DMA/MXU.
    # (No channel concat: each tensor goes to the kernel as its own operand.)
    xflats = [
        jnp.pad(a, ((0, 0), (0, 0), (1, 1), (1, 1)), mode="reflect")
        .reshape(N, c, Lfull)
        .astype(compute_dtype)
        for a, c in zip(inputs, cin_list)
    ]

    # Weight as (Cout, 9*Cin): tap-major (ky, kx), channel inner — matches the
    # per-tap channel slices taken inside the kernel.
    w_mat = jnp.transpose(weight, (0, 2, 3, 1)).reshape(Cout, 9 * cin_total)
    w_mat = w_mat.astype(compute_dtype)

    # 1.0 where a padded-flat position is a real output pixel (column < W).
    valid = ((jnp.arange(L) % Wp) < W).astype(jnp.float32).reshape(1, L)

    Nb = images_per_step
    kernel = _make_kernel(cin_list, H, W, Nb)

    in_specs = [
        pl.BlockSpec((Cout, 9 * cin_total), lambda n: (0, 0)),   # weights, resident
        pl.BlockSpec((1, L), lambda n: (0, 0)),                  # validity mask, resident
    ] + [
        pl.BlockSpec((Nb, c, Lfull), lambda n: (n, 0, 0)) for c in cin_list
    ]

    out_flat = pl.pallas_call(
        kernel,
        out_shape=jax.ShapeDtypeStruct((N, Cout, L), inputs[0].dtype),
        grid=(N // Nb,),
        in_specs=in_specs,
        out_specs=pl.BlockSpec((Nb, Cout, L), lambda n: (n, 0, 0)),
        compiler_params=pltpu.CompilerParams(
            dimension_semantics=("parallel",),   # megacore sharding on v7x
        ),
    )(w_mat, valid, *xflats)

    # Padded-flat -> (H, W) interior: tiny XLA pad/reshape/slice on the small output.
    out = jnp.pad(out_flat, ((0, 0), (0, 0), (0, H * Wp - L)))
    return out.reshape(N, Cout, H, Wp)[:, :, :, :W]


def dense_layer_reference(inputs, weight, bias):
    """Pure-JAX reference for validation (keeps the conv bias on purpose)."""
    x = jnp.concatenate(inputs, axis=1)
    xp = jnp.pad(x, ((0, 0), (0, 0), (1, 1), (1, 1)), mode="reflect")
    y = jax.lax.conv_general_dilated(
        xp, weight, window_strides=(1, 1), padding="VALID",
        dimension_numbers=("NCHW", "OIHW", "NCHW"))
    y = y + bias.reshape(1, -1, 1, 1)
    mean = y.mean(axis=(2, 3), keepdims=True)
    var = ((y - mean) ** 2).mean(axis=(2, 3), keepdims=True)
    y = (y - mean) / jnp.sqrt(var + EPS)
    return jnp.maximum(y, 0.0)


if __name__ == "__main__":
    # DenseLayer(n_ch=8, growth_rate=8); forward(*inputs) concatenates along C.
    # (torch.utils.checkpoint is a training-time memory trick; forward math is
    # identical, so it is not reproduced here.)
    key = jax.random.PRNGKey(0)
    k1, k2, kw, kb = jax.random.split(key, 4)

    x1 = jax.random.normal(k1, (2, 4, 16, 16), dtype=jnp.float32)
    x2 = jax.random.normal(k2, (2, 4, 16, 16), dtype=jnp.float32)

    n_ch, growth_rate = 8, 8
    weight = jax.random.normal(kw, (growth_rate, n_ch, 3, 3), dtype=jnp.float32) * 0.1
    bias = jax.random.normal(kb, (growth_rate,), dtype=jnp.float32) * 0.1

    ref = dense_layer_reference([x1, x2], weight, bias)

    # f32 compute path: tight agreement with the f32 reference.
    out_f32 = jax.block_until_ready(
        dense_layer_forward([x1, x2], weight, bias, compute_dtype=jnp.float32))
    assert out_f32.shape == (2, growth_rate, 16, 16), out_f32.shape
    assert jnp.allclose(out_f32, ref, atol=1e-4, rtol=1e-4), \
        float(jnp.max(jnp.abs(out_f32 - ref)))

    # bf16 matmul-input path (performance default): loosened tolerance vs f32 ref.
    out = jax.block_until_ready(dense_layer_forward([x1, x2], weight, bias))
    assert out.shape == (2, growth_rate, 16, 16), out.shape
    assert jnp.allclose(out, ref, atol=5e-2, rtol=5e-2), \
        float(jnp.max(jnp.abs(out - ref)))

    print("KERNEL_OK")
</pallas_src>

<mosaic_0001>
module attributes {stable_mosaic.version = 11 : i64} {
  func.func @kernel(%arg0: i32, %arg1: memref<8x72xf32, #tpu.memory_space<vmem>>, %arg2: memref<1x286xf32, #tpu.memory_space<vmem>>, %arg3: memref<1x4x324xf32, #tpu.memory_space<vmem>>, %arg4: memref<1x4x324xf32, #tpu.memory_space<vmem>>, %arg5: memref<1x8x286xf32, #tpu.memory_space<vmem>>) attributes {dimension_semantics = [#tpu.dimension_semantics<parallel>], iteration_bounds = array<i64: 2>, scalar_prefetch = 0 : i64, scratch_operands = 0 : i64, tpu.core_type = #tpu.core_type<tc>, window_params = [{pipeline_mode = #tpu.pipeline_mode<synchronous>, transform_indices = @transform_0, window_bounds = array<i64: 8, 72>}, {pipeline_mode = #tpu.pipeline_mode<synchronous>, transform_indices = @transform_1, window_bounds = array<i64: 1, 286>}, {transform_indices = @transform_2, window_bounds = array<i64: 1, 4, 324>}, {transform_indices = @transform_3, window_bounds = array<i64: 1, 4, 324>}, {transform_indices = @transform_4, window_bounds = array<i64: 1, 8, 286>}]} {
    %c0 = arith.constant 0 : index
    %c0_0 = arith.constant 0 : index
    %0 = vector.load %arg1[%c0, %c0_0] : memref<8x72xf32, #tpu.memory_space<vmem>>, vector<8x72xf32>
    %c0_1 = arith.constant 0 : index
    %c0_2 = arith.constant 0 : index
    %1 = vector.load %arg2[%c0_1, %c0_2] : memref<1x286xf32, #tpu.memory_space<vmem>>, vector<1x286xf32>
    %cst = arith.constant 0.000000e+00 : f32
    %2 = vector.broadcast %cst : f32 to vector<8x286xf32>
    %c0_3 = arith.constant 0 : index
    %c0_4 = arith.constant 0 : index
    %c0_5 = arith.constant 0 : index
    %3 = vector.load %arg3[%c0_3, %c0_4, %c0_5] : memref<1x4x324xf32, #tpu.memory_space<vmem>>, vector<1x4x324xf32>
    %4 = vector.shape_cast %3 : vector<1x4x324xf32> to vector<4x324xf32>
    %5 = vector.extract_strided_slice %0 {offsets = [0, 0], sizes = [8, 4], strides = [1, 1]} : vector<8x72xf32> to vector<8x4xf32>
    %6 = vector.extract_strided_slice %4 {offsets = [0, 0], sizes = [4, 286], strides = [1, 1]} : vector<4x324xf32> to vector<4x286xf32>
    %cst_6 = arith.constant dense<0.000000e+00> : vector<8x286xf32>
    %7 = tpu.matmul %5, %6, %cst_6 {dimension_numbers = #tpu.dot_dimension_numbers<[1], [0], [0], [1], [0, 0, 1, 1], [], []>} : vector<8x4xf32>, vector<4x286xf32>, vector<8x286xf32> -> vector<8x286xf32>
    %8 = arith.addf %2, %7 : vector<8x286xf32>
    %9 = vector.extract_strided_slice %0 {offsets = [0, 8], sizes = [8, 4], strides = [1, 1]} : vector<8x72xf32> to vector<8x4xf32>
    %10 = vector.extract_strided_slice %4 {offsets = [0, 1], sizes = [4, 286], strides = [1, 1]} : vector<4x324xf32> to vector<4x286xf32>
    %cst_7 = arith.constant dense<0.000000e+00> : vector<8x286xf32>
    %11 = tpu.matmul %9, %10, %cst_7 {dimension_numbers = #tpu.dot_dimension_numbers<[1], [0], [0], [1], [0, 0, 1, 1], [], []>} : vector<8x4xf32>, vector<4x286xf32>, vector<8x286xf32> -> vector<8x286xf32>
    %12 = arith.addf %8, %11 : vector<8x286xf32>
    %13 = vector.extract_strided_slice %0 {offsets = [0, 16], sizes = [8, 4], strides = [1, 1]} : vector<8x72xf32> to vector<8x4xf32>
    %14 = vector.extract_strided_slice %4 {offsets = [0, 2], sizes = [4, 286], strides = [1, 1]} : vector<4x324xf32> to vector<4x286xf32>
    %cst_8 = arith.constant dense<0.000000e+00> : vector<8x286xf32>
    %15 = tpu.matmul %13, %14, %cst_8 {dimension_numbers = #tpu.dot_dimension_numbers<[1], [0], [0], [1], [0, 0, 1, 1], [], []>} : vector<8x4xf32>, vector<4x286xf32>, vector<8x286xf32> -> vector<8x286xf32>
    %16 = arith.addf %12, %15 : vector<8x286xf32>
    %17 = vector.extract_strided_slice %0 {offsets = [0, 24], sizes = [8, 4], strides = [1, 1]} : vector<8x72xf32> to vector<8x4xf32>
    %18 = vector.extract_strided_slice %4 {offsets = [0, 18], sizes = [4, 286], strides = [1, 1]} : vector<4x324xf32> to vector<4x286xf32>
    %cst_9 = arith.constant dense<0.000000e+00> : vector<8x286xf32>
    %19 = tpu.matmul %17, %18, %cst_9 {dimension_numbers = #tpu.dot_dimension_numbers<[1], [0], [0], [1], [0, 0, 1, 1], [], []>} : vector<8x4xf32>, vector<4x286xf32>, vector<8x286xf32> -> vector<8x286xf32>
    %20 = arith.addf %16, %19 : vector<8x286xf32>
    %21 = vector.extract_strided_slice %0 {offsets = [0, 32], sizes = [8, 4], strides = [1, 1]} : vector<8x72xf32> to vector<8x4xf32>
    %22 = vector.extract_strided_slice %4 {offsets = [0, 19], sizes = [4, 286], strides = [1, 1]} : vector<4x324xf32> to vector<4x286xf32>
    %cst_10 = arith.constant dense<0.000000e+00> : vector<8x286xf32>
    %23 = tpu.matmul %21, %22, %cst_10 {dimension_numbers = #tpu.dot_dimension_numbers<[1], [0], [0], [1], [0, 0, 1, 1], [], []>} : vector<8x4xf32>, vector<4x286xf32>, vector<8x286xf32> -> vector<8x286xf32>
    %24 = arith.addf %20, %23 : vector<8x286xf32>
    %25 = vector.extract_strided_slice %0 {offsets = [0, 40], sizes = [8, 4], strides = [1, 1]} : vector<8x72xf32> to vector<8x4xf32>
    %26 = vector.extract_strided_slice %4 {offsets = [0, 20], sizes = [4, 286], strides = [1, 1]} : vector<4x324xf32> to vector<4x286xf32>
    %cst_11 = arith.constant dense<0.000000e+00> : vector<8x286xf32>
    %27 = tpu.matmul %25, %26, %cst_11 {dimension_numbers = #tpu.dot_dimension_numbers<[1], [0], [0], [1], [0, 0, 1, 1], [], []>} : vector<8x4xf32>, vector<4x286xf32>, vector<8x286xf32> -> vector<8x286xf32>
    %28 = arith.addf %24, %27 : vector<8x286xf32>
    %29 = vector.extract_strided_slice %0 {offsets = [0, 48], sizes = [8, 4], strides = [1, 1]} : vector<8x72xf32> to vector<8x4xf32>
    %30 = vector.extract_strided_slice %4 {offsets = [0, 36], sizes = [4, 286], strides = [1, 1]} : vector<4x324xf32> to vector<4x286xf32>
    %cst_12 = arith.constant dense<0.000000e+00> : vector<8x286xf32>
    %31 = tpu.matmul %29, %30, %cst_12 {dimension_numbers = #tpu.dot_dimension_numbers<[1], [0], [0], [1], [0, 0, 1, 1], [], []>} : vector<8x4xf32>, vector<4x286xf32>, vector<8x286xf32> -> vector<8x286xf32>
    %32 = arith.addf %28, %31 : vector<8x286xf32>
    %33 = vector.extract_strided_slice %0 {offsets = [0, 56], sizes = [8, 4], strides = [1, 1]} : vector<8x72xf32> to vector<8x4xf32>
    %34 = vector.extract_strided_slice %4 {offsets = [0, 37], sizes = [4, 286], strides = [1, 1]} : vector<4x324xf32> to vector<4x286xf32>
    %cst_13 = arith.constant dense<0.000000e+00> : vector<8x286xf32>
    %35 = tpu.matmul %33, %34, %cst_13 {dimension_numbers = #tpu.dot_dimension_numbers<[1], [0], [0], [1], [0, 0, 1, 1], [], []>} : vector<8x4xf32>, vector<4x286xf32>, vector<8x286xf32> -> vector<8x286xf32>
    %36 = arith.addf %32, %35 : vector<8x286xf32>
    %37 = vector.extract_strided_slice %0 {offsets = [0, 64], sizes = [8, 4], strides = [1, 1]} : vector<8x72xf32> to vector<8x4xf32>
    %38 = vector.extract_strided_slice %4 {offsets = [0, 38], sizes = [4, 286], strides = [1, 1]} : vector<4x324xf32> to vector<4x286xf32>
    %cst_14 = arith.constant dense<0.000000e+00> : vector<8x286xf32>
    %39 = tpu.matmul %37, %38, %cst_14 {dimension_numbers = #tpu.dot_dimension_numbers<[1], [0], [0], [1], [0, 0, 1, 1], [], []>} : vector<8x4xf32>, vector<4x286xf32>, vector<8x286xf32> -> vector<8x286xf32>
    %40 = arith.addf %36, %39 : vector<8x286xf32>
    %c0_15 = arith.constant 0 : index
    %c0_16 = arith.constant 0 : index
    %c0_17 = arith.constant 0 : index
    %41 = vector.load %arg4[%c0_15, %c0_16, %c0_17] : memref<1x4x324xf32, #tpu.memory_space<vmem>>, vector<1x4x324xf32>
    %42 = vector.shape_cast %41 : vector<1x4x324xf32> to vector<4x324xf32>
    %43 = vector.extract_strided_slice %0 {offsets = [0, 4], sizes = [8, 4], strides = [1, 1]} : vector<8x72xf32> to vector<8x4xf32>
    %44 = vector.extract_strided_slice %42 {offsets = [0, 0], sizes = [4, 286], strides = [1, 1]} : vector<4x324xf32> to vector<4x286xf32>
    %cst_18 = arith.constant dense<0.000000e+00> : vector<8x286xf32>
    %45 = tpu.matmul %43, %44, %cst_18 {dimension_numbers = #tpu.dot_dimension_numbers<[1], [0], [0], [1], [0, 0, 1, 1], [], []>} : vector<8x4xf32>, vector<4x286xf32>, vector<8x286xf32> -> vector<8x286xf32>
    %46 = arith.addf %40, %45 : vector<8x286xf32>
    %47 = vector.extract_strided_slice %0 {offsets = [0, 12], sizes = [8, 4], strides = [1, 1]} : vector<8x72xf32> to vector<8x4xf32>
    %48 = vector.extract_strided_slice %42 {offsets = [0, 1], sizes = [4, 286], strides = [1, 1]} : vector<4x324xf32> to vector<4x286xf32>
    %cst_19 = arith.constant dense<0.000000e+00> : vector<8x286xf32>
    %49 = tpu.matmul %47, %48, %cst_19 {dimension_numbers = #tpu.dot_dimension_numbers<[1], [0], [0], [1], [0, 0, 1, 1], [], []>} : vector<8x4xf32>, vector<4x286xf32>, vector<8x286xf32> -> vector<8x286xf32>
    %50 = arith.addf %46, %49 : vector<8x286xf32>
    %51 = vector.extract_strided_slice %0 {offsets = [0, 20], sizes = [8, 4], strides = [1, 1]} : vector<8x72xf32> to vector<8x4xf32>
    %52 = vector.extract_strided_slice %42 {offsets = [0, 2], sizes = [4, 286], strides = [1, 1]} : vector<4x324xf32> to vector<4x286xf32>
    %cst_20 = arith.constant dense<0.000000e+00> : vector<8x286xf32>
    %53 = tpu.matmul %51, %52, %cst_20 {dimension_numbers = #tpu.dot_dimension_numbers<[1], [0], [0], [1], [0, 0, 1, 1], [], []>} : vector<8x4xf32>, vector<4x286xf32>, vector<8x286xf32> -> vector<8x286xf32>
    %54 = arith.addf %50, %53 : vector<8x286xf32>
    %55 = vector.extract_strided_slice %0 {offsets = [0, 28], sizes = [8, 4], strides = [1, 1]} : vector<8x72xf32> to vector<8x4xf32>
    %56 = vector.extract_strided_slice %42 {offsets = [0, 18], sizes = [4, 286], strides = [1, 1]} : vector<4x324xf32> to vector<4x286xf32>
    %cst_21 = arith.constant dense<0.000000e+00> : vector<8x286xf32>
    %57 = tpu.matmul %55, %56, %cst_21 {dimension_numbers = #tpu.dot_dimension_numbers<[1], [0], [0], [1], [0, 0, 1, 1], [], []>} : vector<8x4xf32>, vector<4x286xf32>, vector<8x286xf32> -> vector<8x286xf32>
    %58 = arith.addf %54, %57 : vector<8x286xf32>
    %59 = vector.extract_strided_slice %0 {offsets = [0, 36], sizes = [8, 4], strides = [1, 1]} : vector<8x72xf32> to vector<8x4xf32>
    %60 = vector.extract_strided_slice %42 {offsets = [0, 19], sizes = [4, 286], strides = [1, 1]} : vector<4x324xf32> to vector<4x286xf32>
    %cst_22 = arith.constant dense<0.000000e+00> : vector<8x286xf32>
    %61 = tpu.matmul %59, %60, %cst_22 {dimension_numbers = #tpu.dot_dimension_numbers<[1], [0], [0], [1], [0, 0, 1, 1], [], []>} : vector<8x4xf32>, vector<4x286xf32>, vector<8x286xf32> -> vector<8x286xf32>
    %62 = arith.addf %58, %61 : vector<8x286xf32>
    %63 = vector.extract_strided_slice %0 {offsets = [0, 44], sizes = [8, 4], strides = [1, 1]} : vector<8x72xf32> to vector<8x4xf32>
    %64 = vector.extract_strided_slice %42 {offsets = [0, 20], sizes = [4, 286], strides = [1, 1]} : vector<4x324xf32> to vector<4x286xf32>
    %cst_23 = arith.constant dense<0.000000e+00> : vector<8x286xf32>
    %65 = tpu.matmul %63, %64, %cst_23 {dimension_numbers = #tpu.dot_dimension_numbers<[1], [0], [0], [1], [0, 0, 1, 1], [], []>} : vector<8x4xf32>, vector<4x286xf32>, vector<8x286xf32> -> vector<8x286xf32>
    %66 = arith.addf %62, %65 : vector<8x286xf32>
    %67 = vector.extract_strided_slice %0 {offsets = [0, 52], sizes = [8, 4], strides = [1, 1]} : vector<8x72xf32> to vector<8x4xf32>
    %68 = vector.extract_strided_slice %42 {offsets = [0, 36], sizes = [4, 286], strides = [1, 1]} : vector<4x324xf32> to vector<4x286xf32>
    %cst_24 = arith.constant dense<0.000000e+00> : vector<8x286xf32>
    %69 = tpu.matmul %67, %68, %cst_24 {dimension_numbers = #tpu.dot_dimension_numbers<[1], [0], [0], [1], [0, 0, 1, 1], [], []>} : vector<8x4xf32>, vector<4x286xf32>, vector<8x286xf32> -> vector<8x286xf32>
    %70 = arith.addf %66, %69 : vector<8x286xf32>
    %71 = vector.extract_strided_slice %0 {offsets = [0, 60], sizes = [8, 4], strides = [1, 1]} : vector<8x72xf32> to vector<8x4xf32>
    %72 = vector.extract_strided_slice %42 {offsets = [0, 37], sizes = [4, 286], strides = [1, 1]} : vector<4x324xf32> to vector<4x286xf32>
    %cst_25 = arith.constant dense<0.000000e+00> : vector<8x286xf32>
    %73 = tpu.matmul %71, %72, %cst_25 {dimension_numbers = #tpu.dot_dimension_numbers<[1], [0], [0], [1], [0, 0, 1, 1], [], []>} : vector<8x4xf32>, vector<4x286xf32>, vector<8x286xf32> -> vector<8x286xf32>
    %74 = arith.addf %70, %73 : vector<8x286xf32>
    %75 = vector.extract_strided_slice %0 {offsets = [0, 68], sizes = [8, 4], strides = [1, 1]} : vector<8x72xf32> to vector<8x4xf32>
    %76 = vector.extract_strided_slice %42 {offsets = [0, 38], sizes = [4, 286], strides = [1, 1]} : vector<4x324xf32> to vector<4x286xf32>
    %cst_26 = arith.constant dense<0.000000e+00> : vector<8x286xf32>
    %77 = tpu.matmul %75, %76, %cst_26 {dimension_numbers = #tpu.dot_dimension_numbers<[1], [0], [0], [1], [0, 0, 1, 1], [], []>} : vector<8x4xf32>, vector<4x286xf32>, vector<8x286xf32> -> vector<8x286xf32>
    %78 = arith.addf %74, %77 : vector<8x286xf32>
    %79 = vector.broadcast %1 : vector<1x286xf32> to vector<8x286xf32>
    %80 = arith.mulf %78, %79 : vector<8x286xf32>
    %cst_27 = arith.constant dense<0.000000e+00> : vector<8xf32>
    %81 = vector.multi_reduction <add>, %80, %cst_27 [1] : vector<8x286xf32> to vector<8xf32>
    %82 = vector.shape_cast %81 : vector<8xf32> to vector<8x1xf32>
    %83 = arith.mulf %80, %78 : vector<8x286xf32>
    %cst_28 = arith.constant dense<0.000000e+00> : vector<8xf32>
    %84 = vector.multi_reduction <add>, %83, %cst_28 [1] : vector<8x286xf32> to vector<8xf32>
    %85 = vector.shape_cast %84 : vector<8xf32> to vector<8x1xf32>
    %cst_29 = arith.constant 3.906250e-03 : f32
    %86 = vector.broadcast %cst_29 : f32 to vector<8x1xf32>
    %87 = arith.mulf %82, %86 : vector<8x1xf32>
    %cst_30 = arith.constant 3.906250e-03 : f32
    %88 = vector.broadcast %cst_30 : f32 to vector<8x1xf32>
    %89 = arith.mulf %85, %88 : vector<8x1xf32>
    %90 = arith.mulf %87, %87 : vector<8x1xf32>
    %91 = arith.subf %89, %90 : vector<8x1xf32>
    %cst_31 = arith.constant 0.000000e+00 : f32
    %92 = vector.broadcast %cst_31 : f32 to vector<8x1xf32>
    %93 = arith.maximumf %91, %92 : vector<8x1xf32>
    %94 = vector.broadcast %87 : vector<8x1xf32> to vector<8x286xf32>
    %95 = arith.subf %78, %94 : vector<8x286xf32>
    %cst_32 = arith.constant 9.99999974E-6 : f32
    %96 = vector.broadcast %cst_32 : f32 to vector<8x1xf32>
    %97 = arith.addf %93, %96 : vector<8x1xf32>
    %98 = math.rsqrt %97 : vector<8x1xf32>
    %99 = vector.broadcast %98 : vector<8x1xf32> to vector<8x286xf32>
    %100 = arith.mulf %95, %99 : vector<8x286xf32>
    %cst_33 = arith.constant 0.000000e+00 : f32
    %101 = vector.broadcast %cst_33 : f32 to vector<8x286xf32>
    %102 = arith.maximumf %100, %101 : vector<8x286xf32>
    %c0_34 = arith.constant 0 : index
    %c0_35 = arith.constant 0 : index
    %c0_36 = arith.constant 0 : index
    %103 = vector.load %arg5[%c0_34, %c0_35, %c0_36] : memref<1x8x286xf32, #tpu.memory_space<vmem>>, vector<1x8x286xf32>
    %104 = vector.shape_cast %103 : vector<1x8x286xf32> to vector<8x286xf32>
    %105 = vector.shape_cast %102 : vector<8x286xf32> to vector<1x8x286xf32>
    tpu.vector_store %arg5[%c0_34, %c0_35, %c0_36], %105 {strides = array<i32>} : memref<1x8x286xf32, #tpu.memory_space<vmem>>, vector<1x8x286xf32>,
    return
  }
  func.func @transform_0(%arg0: i32) -> (i32, i32) {
    %c0_i32 = arith.constant 0 : i32
    %c0_i32_0 = arith.constant 0 : i32
    %c0_i32_1 = arith.constant 0 : i32
    return %c0_i32, %c0_i32_0 : i32, i32
  }
  func.func @transform_1(%arg0: i32) -> (i32, i32) {
    %c0_i32 = arith.constant 0 : i32
    %c0_i32_0 = arith.constant 0 : i32
    %c0_i32_1 = arith.constant 0 : i32
    return %c0_i32, %c0_i32_0 : i32, i32
  }
  func.func @transform_2(%arg0: i32) -> (i32, i32, i32) {
    %c0_i32 = arith.constant 0 : i32
    %c0_i32_0 = arith.constant 0 : i32
    %c0_i32_1 = arith.constant 0 : i32
    return %arg0, %c0_i32, %c0_i32_0 : i32, i32, i32
  }
  func.func @transform_3(%arg0: i32) -> (i32, i32, i32) {
    %c0_i32 = arith.constant 0 : i32
    %c0_i32_0 = arith.constant 0 : i32
    %c0_i32_1 = arith.constant 0 : i32
    return %arg0, %c0_i32, %c0_i32_0 : i32, i32, i32
  }
  func.func @transform_4(%arg0: i32) -> (i32, i32, i32) {
    %c0_i32 = arith.constant 0 : i32
    %c0_i32_0 = arith.constant 0 : i32
    %c0_i32_1 = arith.constant 0 : i32
    return %arg0, %c0_i32, %c0_i32_0 : i32, i32, i32
  }
}

</mosaic_0001>

<bundles_post_ra>
// kernel: tpu_custom_call.1
= control target key start
LH: loop header
LB: loop body
LE: loop exit
PB: predicated region body
PF: predicated region fallthrough
CT: control target
= control target key end

     0   :  { %9 = vsyncpa [#allocation3], 0  ;;  %s4542_s0 = inlined_call_operand.hbm [shape: f32[8,72], index: 0, kind: input, shape index: {}]   ;;  %s4543_s1 = inlined_call_operand.vmem [shape: f32[1,286], index: 1, kind: input, shape index: {}]   ;;  %s4544_s2 = inlined_call_operand.hbm [shape: f32[2,4,324], index: 2, kind: input, shape index: {}]   ;;  %s4545_s3 = inlined_call_operand.hbm [shape: f32[2,4,324], index: 3, kind: input, shape index: {}]   ;;  %s4546_s4 = inlined_call_operand.hbm [shape: f32[2,8,286], index: 4, kind: output, shape index: {}]  }
   0x1   :  { %10 = vsyncpa [#allocation6], 0 }
   0x2   :  { %12 = vsyncpa [#allocation6 + $0x1], 0 }
   0x3   :  { %13 = vsyncpa [#allocation4], 0 }
   0x4   :  { %15 = vsyncpa [#allocation4 + $0x1], 0  ;;  %s3953_s15 = smov 0   ;;  %s3955_s16 = smov 0  }
   0x5   :  { %s3957_s17 = smov 0   ;;  %s3959_s18 = smov 0  }
   0x6 LB: > { %s3974_s19 = sadd.s32 1, %s3897_s18   ;;  %s70_s20 = sadd.s32 1, %s3893_s17  ;;  %s3897_s18 = sphi %s3959_s18, %s4567_s18   ;;  %s3893_s17 = sphi %s3957_s17, %s4566_s17   ;;  %s3889_s16 = sphi %s3955_s16, %s4565_s16   ;;  %s3885_s15 = sphi %s3953_s15, %s4564_s15  }
   0x7   : > { %s67_s21 = ssub.s32 %s3897_s18, %s3974_s19  ;;  %p77_p0 = scmp.ne.s32.totalorder %s3893_s17, %s3889_s16 }
   0x8   : > { %p68_p1 = scmp.eq.s32.totalorder %s67_s21, 0  ;;  %p78_p2 = scmp.eq.s32.totalorder %s3897_s18, 0 }
   0x9   : > { %p3674_p4 = scmp.lt.s32.totalorder %s3897_s18, 2  ;;  %s173_s23 = sand.u32 1, %s3897_s18  }
   0xa   : > { %s3985_s22 = scalar_select %p68_p1, %s3893_s17, %s70_s20  }
   0xb   : > { %p79_p5 = por %p78_p2, %p77_p0  ;;  %s175_s24 = sand.u32 1, %s3893_s17  }
   0xc   : > { %s3992_s25 = smul.u32 12, %s175_s24  ;;  %s4009_s7 = scalar_lea.sflag [#allocation6], %s173_s23 }
   0xd   : > { %p3994_p6 = pnand %p3674_p4, %p79_p5  ;;  %s3642_s27 = smul.u32 192, %s3897_s18 }
   0xe   : > { %s177_s5 = scalar_lea.vmem [#allocation5], %s3992_s25  ;;  %s3744_s11 = scalar_lea.hbm %s4544_s2, 384 }
   0xf   : > { %s4004_s30 = scalar_lea.hbm %s4544_s2, %s3642_s27  ;;  %s185_s6 = sshll.u32 %s177_s5, 4  ;;  %s4007_s6 = int_to_ptr.vmem [resolvable:$true] %s185_s6 }
  0x10   : > { %s3739_s8 = scalar_lea.hbm %s4004_s30, 192  ;;  %p3741_p8 = pneg %p3994_p6 }
  0x11   : > { %p3740_p7 = scmp.ne.s32.totalorder %s4004_s30, %s3739_s8  ;;  %p3745_p11 = scmp.lt.u32.totalorder %s4004_s30, %s4544_s2 }
  0x12   : > { %p3746_p12 = scmp.lt.u32.totalorder %s3744_s11, %s3739_s8  ;;  %p3748_p1 = scmp.lt.u32.totalorder %s3739_s8, %s4004_s30 }
  0x13   : > { %p3742_p9 = pnand %p3741_p8, %p3740_p7 }
  0x14   : > { %p3747_p13 = por %p3746_p12, %p3745_p11 }
  0x15   : > { %p3743_p10 = pneg %p3742_p9 }
  0x16   : > { %p3749_p2 = por %p3748_p1, %p3747_p13 }
  0x18   : > { %p3750_p4 = pnand %p3749_p2, %p3743_p10 }
  0x1a   : > { %3753 = shalt.err (!%p3750_p4)
}
  0x1b   : > { %s3754_s14 = scalar_lea.vmem %s4007_s6, 192  ;;  %s3899_s20 = smov [#allocation5]  }
  0x1c   : > { %p3755_p5 = scmp.ne.s32.totalorder %s4007_s6, %s3754_s14  ;;  %s3759_s21 = sshll.u32 %s3899_s20, 4  ;;  %s3760_s21 = int_to_ptr.vmem [resolvable:$false] %s3759_s21 }
  0x1d   : > { %s3761_s23 = scalar_lea.vmem %s3760_s21, 384  ;;  %p3762_p3 = scmp.lt.s32.totalorder %s4007_s6, %s3760_s21 }
  0x1e   : > { %p3757_p7 = pnand %p3755_p5, %p3741_p8  ;;  %p3763_p11 = scmp.lt.s32.totalorder %s3761_s23, %s3754_s14 }
  0x20   : > { %p3758_p9 = pneg %p3757_p7  ;;  %p3764_p12 = por %p3763_p11, %p3762_p3 }
  0x22   : > { %p3765_p13 = pnand %p3764_p12, %p3758_p9 }
  0x24   : > { %3768 = shalt.err (!%p3765_p13)
}
  0x25   : > { %3665 = dma.hbm_to_vmem [thread:$0]  (!%p3994_p6), %s4004_s30, 192, %s4007_s6, %s4009_s7  }
  0x26   : > { %s4038_s24 = sadd.s32 4294967295, %s3897_s18   ;;  %s3346_s28 = sadd.s32 4294967294, %s3897_s18  }
  0x27   : > { %p83_p3 = scmp.ne.s32.totalorder %s3889_s16, %s3885_s15  ;;  %p4547_p10 = scmp.eq.s32.totalorder %s4038_s24, 0 }
  0x28   : > { %p133_p1 = scmp.eq.s32.totalorder %s4038_s24, 1  ;;  %p139_p2 = scmp.eq.s32.totalorder %s3346_s28, 1 }
  0x29   : > { %p4047_p4 = por %p4547_p10, %p83_p3  ;;  %p3347_p5 = scmp.ge.s32.totalorder %s3897_s18, 1 }
  0x2a   : > { %p4055_p7 = por %p133_p1, %p77_p0  ;;  %p4059_p9 = por %p139_p2, %p83_p3 }
  0x2b   : > { %s4552_s29 = scalar_select %p4047_p4, 1, 0 }
  0x2c   : > { %s4553_s30 = scalar_select %p4055_p7, 1, 0 }
  0x2d   : > { %s4554_s5 = scalar_select %p4059_p9, 1, 0 }
  0x2e   : > { %p146_p11 = scmp.lt.s32.totalorder %s3897_s18, 3  ;;  %s3900_s8 = smov [#allocation2]  }
  0x2f   : > { %s159_s9 = sshll.u32 %s3900_s8, 4  ;;  %s4073_s12 = scalar_lea.hbm %s4545_s3, %s3642_s27  ;;  %s4080_s9 = int_to_ptr.vmem [resolvable:$true] %s159_s9 }
  0x30   : > { %p4064_p12 = pnand %p3347_p5, %p146_p11  ;;  %s196_s13 = scalar_lea.vmem [#allocation7], %s3992_s25 }
  0x31   : > { %s204_s14 = sshll.u32 %s196_s13, 4  ;;  %s3769_s21 = scalar_lea.hbm %s4073_s12, 192  ;;  %s4078_s14 = int_to_ptr.vmem [resolvable:$true] %s204_s14 }
  0x32   : > { %s4555_s6 = scalar_select %p4064_p12, 1, 0 }
  0x33   : > { %p3658_p0 = pneg %p4064_p12  ;;  %p3770_p3 = scmp.ne.s32.totalorder %s4073_s12, %s3769_s21 }
  0x34   : > { %s3774_s25 = scalar_lea.hbm %s4545_s3, 384  ;;  %p3775_p5 = scmp.lt.u32.totalorder %s4073_s12, %s4545_s3 }
  0x35   : > { %p4084_p13 = pnand %p3658_p0, %p4547_p10  ;;  %p3772_p1 = pnand %p3770_p3, %p3741_p8 }
  0x36   : > { %p3776_p11 = scmp.lt.u32.totalorder %s3774_s25, %s3769_s21  ;;  %p3778_p0 = scmp.lt.u32.totalorder %s3769_s21, %s4073_s12 }
  0x37   : > { %p3773_p2 = pneg %p3772_p1 }
  0x38   : > { %p3777_p9 = por %p3776_p11, %p3775_p5 }
  0x3a   : > { %p3779_p10 = por %p3778_p0, %p3777_p9 }
  0x3c   : > { %p3780_p7 = pnand %p3779_p10, %p3773_p2 }
  0x3e   : > { %3783 = shalt.err (!%p3780_p7)
}
  0x3f   : > { %s3784_s10 = scalar_lea.vmem %s4078_s14, 192  ;;  %s3901_s11 = smov [#allocation7]  }
  0x40   : > { %p3785_p3 = scmp.ne.s32.totalorder %s4078_s14, %s3784_s10  ;;  %s3789_s13 = sshll.u32 %s3901_s11, 4  ;;  %s3790_s13 = int_to_ptr.vmem [resolvable:$false] %s3789_s13 }
  0x41   : > { %s3791_s27 = scalar_lea.vmem %s3790_s13, 384  ;;  %p3792_p12 = scmp.lt.s32.totalorder %s4078_s14, %s3790_s13 }
  0x42   : > { %p3787_p1 = pnand %p3785_p3, %p3741_p8  ;;  %p3793_p5 = scmp.lt.s32.totalorder %s3791_s27, %s3784_s10 }
  0x44   : > { %p3788_p4 = pneg %p3787_p1  ;;  %p3794_p11 = por %p3793_p5, %p3792_p12 }
  0x46   : > { %p3795_p9 = pnand %p3794_p11, %p3788_p4 }
  0x48   : > { %3798 = shalt.err (!%p3795_p9)
}
  0x49   : > { %3668 = dma.hbm_to_vmem [thread:$0]  (!%p3994_p6), %s4073_s12, 192, %s4078_s14, %s4009_s7  }
  0x4a   : > { %s3799_s25 = scalar_lea.hbm %s4542_s0, 128  ;;  %p3801_p10 = pneg %p4084_p13 }
  0x4b   : > { %p3800_p8 = scmp.ne.s32.totalorder %s4542_s0, %s3799_s25  ;;  %p3806_p12 = scmp.lt.u32.totalorder %s3799_s25, %s4542_s0 }
  0x4d   : > { %p3802_p7 = pnand %p3801_p10, %p3800_p8 }
  0x4f   : > { %p3803_p4 = pneg %p3802_p7 }
  0x51   : > { %p3808_p2 = pnand %p3806_p12, %p3803_p4 }
  0x53   : > { %3811 = shalt.err (!%p3808_p2)
}
  0x54   : > { %s3812_s26 = scalar_lea.vmem %s4080_s9, 128  ;;  %p3820_p1 = scmp.lt.s32.totalorder %s4080_s9, %s4080_s9 }
  0x55   : > { %p3813_p6 = scmp.ne.s32.totalorder %s4080_s9, %s3812_s26  ;;  %p3821_p5 = scmp.lt.s32.totalorder %s3812_s26, %s3812_s26 }
  0x57   : > { %p3815_p0 = pnand %p3813_p6, %p3801_p10  ;;  %p3822_p11 = por %p3821_p5, %p3820_p1 }
  0x59   : > { %p3816_p3 = pneg %p3815_p0 }
  0x5b   : > { %p3823_p9 = pnand %p3822_p11, %p3816_p3 }
  0x5d   : > { %3826 = shalt.err (!%p3823_p9)
}
  0x5e   : > { %3661 = dma.hbm_to_vmem [thread:$0]  (!%p4084_p13), %s4542_s0, 128, %s4080_s9, [#allocation3]  }
  0x5f   : > { %p4557_p8 = scmp.ne.s32.totalorder %s4555_s6, 0 }
  0x60   : > { %p4558_p7 = scmp.eq.s32.totalorder (!%p4557_p8), %s4038_s24, 0 }
  0x61   : > { %213 = sbr.rel (%p4557_p8) target bundleno = 772 (0x304), region = 36 }
  0x68   : > { %3872 = dma.done.wait (%p4558_p7), [#allocation3], 128   ;;  %p4559_p10 = pmov %p4558_p7 }
  0x69   : > { %s219_s14 = sand.u32 1, %s4038_s24   ;;  %s4141_s13 = sand.u32 1, %s3889_s16  }
  0x6a   : > { %3874 = vsyncadd (%p4559_p10), [#allocation3], 4294967168  ;;  %s3645_s20 = smul.u32 12, %s4141_s13  ;;  %s220_s27 = scalar_lea.sflag [#allocation6], %s219_s14 }
  0x6b   : > { %p4560_p13 = scmp.ne.s32.totalorder %s4552_s29, 0 }
  0x6c   : > { %s223_s9 = scalar_lea.vmem [#allocation5], %s3645_s20 }
  0x6d   : > { %3876 = dma.done.wait (%p4560_p13), %s220_s27, 384  }
  0x6e   : > { %3878 = vsyncadd (%p4560_p13), %s220_s27, 4294966912  ;;  %v3902_v0 = vmov 0.0   ;;  %vm3903_vm0 = vmmov 0   ;;  %v4154_v1 = vld [vmem:[%s223_s9] sm:$0xff]  ;;  %s3904_s6 = smov 127   ;;  %v4162_v3 = vld [vmem:[#allocation2] sm:$0xff] }
  0x6f   : > { %3483 = vmatprep.subr.mxu1 %v3902_v0  ;;  %3485 = vmatprep.mubr.msk.f32.mxu1 %vm3903_vm0, %v3902_v0  ;;  %v4160_v2 = vcombine.high %v4154_v1, %v4154_v1  ;;  %v4166_v4 = vld [vmem:[%s223_s9 + $0x8] sm:$0xf]  ;;  %s3905_s29 = smov 120   ;;  %s3906_s21 = smov 126   ;;  %vm284_vm1 = vcmask 1043456   ;;  %vm278_vm2 = vcmask 1039360  }
  0x70   : > { %355 = vmatprep.mubr.f32.mxu0 %v3902_v0  ;;  %272 = vrot.lane.b32.xlu1 %v4154_v1, %s3904_s6  ;;  %s3907_s23 = smov 112   ;;  %s3908_s25 = smov 110   ;;  %vm281_vm3 = vcmask 31744   ;;  %vm589_vm4 = vcmask 1031168   ;;  %vm752_vm5 = vcmask 900096   ;;  %vm915_vm6 = vcmask 891904  }
  0x71   : > { %274 = vrot.lane.b32.xlu0 %v4160_v2, %s3904_s6  ;;  %s3909_s28 = smov 104   ;;  %s3910_s8 = smov 109   ;;  %vm1078_vm7 = vcmask 883712   ;;  %vm1241_vm8 = vcmask 752640   ;;  %vm1404_vm9 = vcmask 744448   ;;  %vm1567_vm10 = vcmask 736256  }
  0x72   : > { %s3911_s10 = smov 96   ;;  %s3912_s11 = smov 108   ;;  %vm3197_vm11 = vcmask 244736  }
  0x73   : > { %s3913_s26 = smov 88   ;;  %s3914_s7 = smov 92  }
  0x74   : > { %267 = vrot.lane.b32.xlu1 %v4162_v3, %s3905_s29  ;;  %s3915_s12 = smov 80   ;;  %s3916_s14 = smov 91  }
  0x75   : > { %276 = vrot.lane.b32.xlu0 %v4166_v4, %s3904_s6  ;;  %s3917_s27 = smov 72   ;;  %s3918_s9 = smov 90  }
  0x76   : > { %s232_s29 = scalar_lea.vmem [#allocation7], %s3645_s20  ;;  %s3921_s20 = smov 116  }
  0x77   : > { %v4217_v5 = vld [vmem:[%s232_s29] sm:$0xff]  ;;  %v4231_v7 = vld [vmem:[%s232_s29 + $0x8] sm:$0xf]  ;;  %p4561_p12 = scmp.ne.s32.totalorder %s4553_s30, 0 }
  0x78   : > { %587 = vrot.lane.b32.xlu1 %v4166_v4, %s3906_s21  ;;  %v4224_v6 = vcombine.high %v4217_v5, %v4217_v5 }
  0x79   : > { %585 = vrot.lane.b32.xlu0 %v4160_v2, %s3906_s21 }
  0x7c   : > { %581 = vrot.lane.b32.xlu1 %v4162_v3, %s3907_s23  ;;  %s3919_s23 = smov 64  }
  0x7d   : > { %583 = vrot.lane.b32.xlu0 %v4154_v1, %s3906_s21 }
  0x80   : > { %750 = vrot.lane.b32.xlu1 %v4166_v4, %s3908_s25 }
  0x81   : > { %748 = vrot.lane.b32.xlu0 %v4160_v2, %s3908_s25 }
  0x84   : > { %744 = vrot.lane.b32.xlu1 %v4162_v3, %s3909_s28  ;;  %s3920_s28 = smov 124  }
  0x85   : > { %746 = vrot.lane.b32.xlu0 %v4154_v1, %s3908_s25 }
  0x88   : > { %913 = vrot.lane.b32.xlu1 %v4166_v4, %s3910_s8 }
  0x89   : > { %911 = vrot.lane.b32.xlu0 %v4160_v2, %s3910_s8 }
  0x8c   : > { %907 = vrot.lane.b32.xlu1 %v4162_v3, %s3911_s10  ;;  %s3926_s10 = smov 60  }
  0x8d   : > { %909 = vrot.lane.b32.xlu0 %v4154_v1, %s3910_s8 }
  0x90   : > { %1076 = vrot.lane.b32.xlu1 %v4166_v4, %s3912_s11 }
  0x91   : > { %1074 = vrot.lane.b32.xlu0 %v4160_v2, %s3912_s11 }
  0x94   : > { %1070 = vrot.lane.b32.xlu1 %v4162_v3, %s3913_s26 }
  0x95   : > { %1072 = vrot.lane.b32.xlu0 %v4154_v1, %s3912_s11 }
  0x98   : > { %1239 = vrot.lane.b32.xlu1 %v4166_v4, %s3914_s7 }
  0x99   : > { %1237 = vrot.lane.b32.xlu0 %v4160_v2, %s3914_s7 }
  0x9c   : > { %1233 = vrot.lane.b32.xlu1 %v4162_v3, %s3915_s12  ;;  %s3647_s12 = smul.u32 384, %s4038_s24  ;;  %s3230_s24 = scalar_lea.sflag [#allocation4], %s4141_s13 }
  0x9d   : > { %1235 = vrot.lane.b32.xlu0 %v4154_v1, %s3914_s7 }
  0xa0   : > { %1402 = vrot.lane.b32.xlu1 %v4166_v4, %s3916_s14 }
  0xa1   : > { %1400 = vrot.lane.b32.xlu0 %v4160_v2, %s3916_s14 }
  0xa4   : > { %1396 = vrot.lane.b32.xlu1 %v4162_v3, %s3917_s27 }
  0xa5   : > { %1398 = vrot.lane.b32.xlu0 %v4154_v1, %s3916_s14 }
  0xa8   : > { %1565 = vrot.lane.b32.xlu1 %v4166_v4, %s3918_s9 }
  0xa9   : > { %1563 = vrot.lane.b32.xlu0 %v4160_v2, %s3918_s9 }
  0xac   : > { %1559 = vrot.lane.b32.xlu1 %v4162_v3, %s3919_s23  ;;  %s4497_s23 = scalar_lea.hbm %s4546_s4, %s3647_s12 }
  0xad   : > { %1561 = vrot.lane.b32.xlu0 %v4154_v1, %s3918_s9 }
  0xb0   : > { %1885 = vrot.lane.b32.xlu1 %v4224_v6, %s3904_s6 }
  0xb1   : > { %1724 = vrot.lane.b32.xlu0 %v4162_v3, %s3920_s28 }
  0xb4   : > { %1883 = vrot.lane.b32.xlu1 %v4217_v5, %s3904_s6 }
  0xb5   : > { %1887 = vrot.lane.b32.xlu0 %v4231_v7, %s3904_s6  ;;  %s3922_s6 = smov 100  }
  0xb8   : > { %2047 = vrot.lane.b32.xlu1 %v4224_v6, %s3906_s21 }
  0xb9   : > { %1881 = vrot.lane.b32.xlu0 %v4162_v3, %s3921_s20  ;;  %s3927_s20 = smov [#allocation8]  }
  0xbc   : > { %2045 = vrot.lane.b32.xlu1 %v4217_v5, %s3906_s21 }
  0xbd   : > { %2049 = vrot.lane.b32.xlu0 %v4231_v7, %s3906_s21  ;;  %s3923_s21 = smov 84  }
  0xc0   : > { %2209 = vrot.lane.b32.xlu1 %v4224_v6, %s3908_s25 }
  0xc1   : > { %2043 = vrot.lane.b32.xlu0 %v4162_v3, %s3912_s11 }
  0xc4   : > { %2207 = vrot.lane.b32.xlu1 %v4217_v5, %s3908_s25 }
  0xc5   : > { %2211 = vrot.lane.b32.xlu0 %v4231_v7, %s3908_s25  ;;  %s3924_s25 = smov 76  }
  0xc8   : > { %2371 = vrot.lane.b32.xlu1 %v4224_v6, %s3910_s8 }
  0xc9   : > { %2205 = vrot.lane.b32.xlu0 %v4162_v3, %s3922_s6  ;;  %s3831_s6 = sshll.u32 %s3927_s20, 4  ;;  %s3832_s6 = int_to_ptr.vmem [resolvable:$false] %s3831_s6 }
  0xcc   : > { %2369 = vrot.lane.b32.xlu1 %v4217_v5, %s3910_s8 }
  0xcd   : > { %2373 = vrot.lane.b32.xlu0 %v4231_v7, %s3910_s8  ;;  %s3925_s8 = smov 68  }
  0xd0   : > { %2533 = vrot.lane.b32.xlu1 %v4224_v6, %s3912_s11 }
  0xd1   : > { %2367 = vrot.lane.b32.xlu0 %v4162_v3, %s3914_s7 }
  0xd4   : > { %2531 = vrot.lane.b32.xlu1 %v4217_v5, %s3912_s11 }
  0xd5   : > { %2535 = vrot.lane.b32.xlu0 %v4231_v7, %s3912_s11 }
  0xd8   : > { %2695 = vrot.lane.b32.xlu1 %v4224_v6, %s3914_s7 }
  0xd9   : > { %2529 = vrot.lane.b32.xlu0 %v4162_v3, %s3923_s21  ;;  %s3833_s21 = scalar_lea.vmem %s3832_s6, 768 }
  0xdc   : > { %2693 = vrot.lane.b32.xlu1 %v4217_v5, %s3914_s7 }
  0xdd   : > { %2697 = vrot.lane.b32.xlu0 %v4231_v7, %s3914_s7  ;;  %s3646_s7 = smul.u32 24, %s4141_s13 }
  0xe0   : > { %2857 = vrot.lane.b32.xlu1 %v4224_v6, %s3916_s14 }
  0xe1   : > { %2691 = vrot.lane.b32.xlu0 %v4162_v3, %s3924_s25 }
  0xe2   : > { %v273_v8 = vpop.permute.xlu1 %272 }
  0xe3   : > { %v275_v9 = vpop.permute.xlu0 %274 }
  0xe4   : > { %2855 = vrot.lane.b32.xlu1 %v4217_v5, %s3916_s14  ;;  %v279_v13 = vsel %vm278_vm2, %v273_v8, %v275_v9 }
  0xe5   : > { %2859 = vrot.lane.b32.xlu0 %v4231_v7, %s3916_s14  ;;  %s261_s14 = scalar_lea.vmem [#allocation8], %s3646_s7 }
  0xe6   : > { %v268_v10 = vpop.permute.xlu1 %267  ;;  %s3244_s27 = sshll.u32 %s261_s14, 4  ;;  %s4499_s27 = int_to_ptr.vmem [resolvable:$true] %s3244_s27 }
  0xe7   : > { %v277_v11 = vpop.permute.xlu0 %276  ;;  %s3827_s28 = scalar_lea.vmem %s4499_s27, 384  ;;  %p3834_p0 = scmp.lt.s32.totalorder %s4499_s27, %s3832_s6 }
  0xe8   : > { %3019 = vrot.lane.b32.xlu1 %v4224_v6, %s3918_s9  ;;  %3484 = vmatpush3.msk.msra.mxu1 %vm284_vm1, %v277_v11  ;;  %v280_v12 = vsel %vm278_vm2, %v275_v9, %v277_v11  ;;  %p3828_p4 = scmp.ne.s32.totalorder %s4499_s27, %s3827_s28  ;;  %p3835_p3 = scmp.lt.s32.totalorder %s3833_s21, %s3827_s28 }
  0xe9   : > { %3354 = vmatprep.subr.msk.mxu0 %vm284_vm1, %v280_v12  ;;  %3486 = vmatmul.mubr.msk.f32.vlgmr.msra.gmra.mrb[0].mxu1 %vm281_vm3, %v268_v10 }
  0xea   : > { %v588_v14 = vpop.permute.xlu1 %587  ;;  %3355 = vmatpush1.msk.msra.mxu0 %vm284_vm1, %v279_v13  ;;  %3488 = vmatprep.subr.mxu1 %v3902_v0  ;;  %p3829_p2 = pnand %p3828_p4, %p4561_p12  ;;  %p3836_p1 = por %p3835_p3, %p3834_p0 }
  0xeb   : > { %3359 = vmatprep.subr.msk.mxu0 %vm284_vm1, %v4160_v2  ;;  %v586_v15 = vpop.permute.xlu0 %585  ;;  %3356 = vmatmul.mubr.msk.f32.vlgmr.msra.gmra.mrb[0].mxu0 %vm281_vm3, %v268_v10 }
  0xec   : > { %3360 = vmatpush1.msk.msra.mxu0 %vm284_vm1, %v4154_v1  ;;  %3489 = vmatpush3.msk.msra.mxu1 %vm284_vm1, %v4166_v4  ;;  %v591_v16 = vsel %vm589_vm4, %v586_v15, %v588_v14  ;;  %p3830_p6 = pneg %p3829_p2 }
  0xed   : > { %2853 = vrot.lane.b32.xlu0 %v4162_v3, %s3925_s8  ;;  %3490 = vmatprep.mubr.msk.f32.mxu1 %vm3903_vm0, %v3902_v0 }
  0xee   : > { %v582_v17 = vpop.permute.xlu1 %581  ;;  %3364 = vmatprep.subr.msk.mxu0 %vm284_vm1, %v591_v16  ;;  %3493 = vmatprep.subr.mxu1 %v3902_v0  ;;  %p3837_p5 = pnand %p3836_p1, %p3830_p6 }
  0xef   : > { %v584_v18 = vpop.permute.xlu0 %583  ;;  %504 = vmatprep.mubr.f32.mxu0 %v3902_v0  ;;  %3017 = vrot.lane.b32.xlu1 %v4217_v5, %s3918_s9 }
  0xf0   : > { %v590_v19 = vsel %vm589_vm4, %v584_v18, %v586_v15 }
  0xf1   : > { %3491 = vmatmul.mubr.msk.f32.vlgmr.msra.gmra.mrb[0].mxu1 %vm281_vm3, %v4162_v3  ;;  %3021 = vrot.lane.b32.xlu0 %v4231_v7, %s3918_s9 }
  0xf2   : > { %v751_v20 = vpop.permute.xlu1 %750  ;;  %3494 = vmatpush3.msk.msra.mxu1 %vm284_vm1, %v588_v14  ;;  %3495 = vmatprep.mubr.msk.f32.mxu1 %vm3903_vm0, %v3902_v0 }
  0xf3   : > { %v749_v21 = vpop.permute.xlu0 %748  ;;  %3361 = vmatmul.mubr.msk.f32.vlgmr.msra.gmra.mrb[0].mxu0 %vm281_vm3, %v4162_v3  ;;  %3498 = vmatprep.subr.mxu1 %v3902_v0 }
  0xf4   : > { %3365 = vmatpush1.msk.msra.mxu0 %vm284_vm1, %v590_v19  ;;  %v754_v22 = vsel %vm752_vm5, %v749_v21, %v751_v20  ;;  %664 = vmatprep.mubr.f32.mxu0 %v3902_v0 }
  0xf5   : > { %3369 = vmatprep.subr.msk.mxu0 %vm284_vm1, %v754_v22  ;;  %3015 = vrot.lane.b32.xlu0 %v4162_v3, %s3926_s10 }
  0xf6   : > { %v745_v23 = vpop.permute.xlu1 %744 }
  0xf7   : > { %v747_v24 = vpop.permute.xlu0 %746 }
  0xf8   : > { %v753_v25 = vsel %vm752_vm5, %v747_v24, %v749_v21 }
  0xf9   : > { %3496 = vmatmul.mubr.msk.f32.vlgmr.msra.gmra.mrb[0].mxu1 %vm281_vm3, %v582_v17 }
  0xfa   : > { %v914_v26 = vpop.permute.xlu1 %913  ;;  %3499 = vmatpush3.msk.msra.mxu1 %vm284_vm1, %v751_v20  ;;  %3500 = vmatprep.mubr.msk.f32.mxu1 %vm3903_vm0, %v3902_v0 }
  0xfb   : > { %v912_v27 = vpop.permute.xlu0 %911  ;;  %3366 = vmatmul.mubr.msk.f32.vlgmr.msra.gmra.mrb[0].mxu0 %vm281_vm3, %v582_v17  ;;  %3503 = vmatprep.subr.mxu1 %v3902_v0 }
  0xfc   : > { %3370 = vmatpush1.msk.msra.mxu0 %vm284_vm1, %v753_v25  ;;  %v917_v28 = vsel %vm915_vm6, %v912_v27, %v914_v26  ;;  %827 = vmatprep.mubr.f32.mxu0 %v3902_v0 }
  0xfd   : > { %3374 = vmatprep.subr.msk.mxu0 %vm284_vm1, %v917_v28 }
  0xfe   : > { %v908_v29 = vpop.permute.xlu1 %907 }
  0xff   : > { %v910_v30 = vpop.permute.xlu0 %909 }
 0x100   : > { %v916_v31 = vsel %vm915_vm6, %v910_v30, %v912_v27 }
 0x101   : > { %3501 = vmatmul.mubr.msk.f32.vlgmr.msra.gmra.mrb[0].mxu1 %vm281_vm3, %v745_v23 }
 0x102   : > { %v1077_v32 = vpop.permute.xlu1 %1076  ;;  %3504 = vmatpush3.msk.msra.mxu1 %vm284_vm1, %v914_v26  ;;  %3505 = vmatprep.mubr.msk.f32.mxu1 %vm3903_vm0, %v3902_v0 }
 0x103   : > { %v1075_v33 = vpop.permute.xlu0 %1074  ;;  %3371 = vmatmul.mubr.msk.f32.vlgmr.msra.gmra.mrb[0].mxu0 %vm281_vm3, %v745_v23  ;;  %3508 = vmatprep.subr.mxu1 %v3902_v0 }
 0x104   : > { %3375 = vmatpush1.msk.msra.mxu0 %vm284_vm1, %v916_v31  ;;  %v1080_v34 = vsel %vm1078_vm7, %v1075_v33, %v1077_v32  ;;  %990 = vmatprep.mubr.f32.mxu0 %v3902_v0 }
 0x105   : > { %3379 = vmatprep.subr.msk.mxu0 %vm284_vm1, %v1080_v34 }
 0x106   : > { %v1071_v35 = vpop.permute.xlu1 %1070 }
 0x107   : > { %v1073_v36 = vpop.permute.xlu0 %1072 }
 0x108   : > { %v1079_v37 = vsel %vm1078_vm7, %v1073_v36, %v1075_v33 }
 0x109   : > { %3506 = vmatmul.mubr.msk.f32.vlgmr.msra.gmra.mrb[0].mxu1 %vm281_vm3, %v908_v29 }
 0x10a   : > { %v1240_v38 = vpop.permute.xlu1 %1239  ;;  %3509 = vmatpush3.msk.msra.mxu1 %vm284_vm1, %v1077_v32  ;;  %3510 = vmatprep.mubr.msk.f32.mxu1 %vm3903_vm0, %v3902_v0 }
 0x10b   : > { %v1238_v39 = vpop.permute.xlu0 %1237  ;;  %3376 = vmatmul.mubr.msk.f32.vlgmr.msra.gmra.mrb[0].mxu0 %vm281_vm3, %v908_v29  ;;  %3513 = vmatprep.subr.mxu1 %v3902_v0 }
 0x10c   : > { %3380 = vmatpush1.msk.msra.mxu0 %vm284_vm1, %v1079_v37  ;;  %v1243_v40 = vsel %vm1241_vm8, %v1238_v39, %v1240_v38  ;;  %1153 = vmatprep.mubr.f32.mxu0 %v3902_v0 }
 0x10d   : > { %3384 = vmatprep.subr.msk.mxu0 %vm284_vm1, %v1243_v40 }
 0x10e   : > { %v1234_v41 = vpop.permute.xlu1 %1233 }
 0x10f   : > { %v1236_v42 = vpop.permute.xlu0 %1235 }
 0x110   : > { %v1242_v43 = vsel %vm1241_vm8, %v1236_v42, %v1238_v39  ;;  %v3178_v42 = vlaneseq }
 0x111   : > { %3511 = vmatmul.mubr.msk.f32.vlgmr.msra.gmra.mrb[0].mxu1 %vm281_vm3, %v1071_v35 }
 0x112   : > { %v1403_v44 = vpop.permute.xlu1 %1402  ;;  %3514 = vmatpush3.msk.msra.mxu1 %vm284_vm1, %v1240_v38  ;;  %3515 = vmatprep.mubr.msk.f32.mxu1 %vm3903_vm0, %v3902_v0 }
 0x113   : > { %v1401_v45 = vpop.permute.xlu0 %1400  ;;  %3381 = vmatmul.mubr.msk.f32.vlgmr.msra.gmra.mrb[0].mxu0 %vm281_vm3, %v1071_v35  ;;  %3518 = vmatprep.subr.mxu1 %v3902_v0 }
 0x114   : > { %3385 = vmatpush1.msk.msra.mxu0 %vm284_vm1, %v1242_v43  ;;  %v1406_v46 = vsel %vm1404_vm9, %v1401_v45, %v1403_v44  ;;  %1316 = vmatprep.mubr.f32.mxu0 %v3902_v0  ;;  %v3179_v43 = vshrl.u32 %v3178_v42, 7 }
 0x115   : > { %3389 = vmatprep.subr.msk.mxu0 %vm284_vm1, %v1406_v46 }
 0x116   : > { %v1397_v47 = vpop.permute.xlu1 %1396  ;;  %v3180_v46 = vsub.s32 0, %v3179_v43 }
 0x117   : > { %v1399_v48 = vpop.permute.xlu0 %1398 }
 0x118   : > { %v1405_v49 = vsel %vm1404_vm9, %v1399_v48, %v1401_v45  ;;  %v263_v45 = vld [vmem:[%s4543_s1] sm:$0x7] }
 0x119   : > { %3516 = vmatmul.mubr.msk.f32.vlgmr.msra.gmra.mrb[0].mxu1 %vm281_vm3, %v1234_v41 }
 0x11a   : > { %v1566_v50 = vpop.permute.xlu1 %1565  ;;  %3519 = vmatpush3.msk.msra.mxu1 %vm284_vm1, %v1403_v44  ;;  %3520 = vmatprep.mubr.msk.f32.mxu1 %vm3903_vm0, %v3902_v0  ;;  %v3188_v44 = vsub.s32 2, %v3179_v43 }
 0x11b   : > { %v1564_v51 = vpop.permute.xlu0 %1563  ;;  %3386 = vmatmul.mubr.msk.f32.vlgmr.msra.gmra.mrb[0].mxu0 %vm281_vm3, %v1234_v41  ;;  %3523 = vmatprep.subr.mxu1 %v3902_v0 }
 0x11c   : > { %3390 = vmatpush1.msk.msra.mxu0 %vm284_vm1, %v1405_v49  ;;  %v1569_v52 = vsel %vm1567_vm10, %v1564_v51, %v1566_v50  ;;  %1479 = vmatprep.mubr.f32.mxu0 %v3902_v0  ;;  %v3189_v48 = vrot.slane %v263_v45, %v3188_v44  ;;  %v3181_v49 = vrot.slane %v263_v45, %v3180_v46 }
 0x11d   : > { %3394 = vmatprep.subr.msk.mxu0 %vm284_vm1, %v1569_v52 }
 0x11e   : > { %v1560_v53 = vpop.permute.xlu1 %1559 }
 0x11f   : > { %v1562_v54 = vpop.permute.xlu0 %1561 }
 0x120   : > { %v1568_v55 = vsel %vm1567_vm10, %v1562_v54, %v1564_v51 }
 0x121   : > { %3521 = vmatmul.mubr.msk.f32.vlgmr.msra.gmra.mrb[0].mxu1 %vm281_vm3, %v1397_v47 }
 0x122   : > { %v1886_v56 = vpop.permute.xlu1 %1885  ;;  %3524 = vmatpush3.msk.msra.mxu1 %vm284_vm1, %v1566_v50  ;;  %3525 = vmatprep.mubr.msk.f32.mxu1 %vm3903_vm0, %v3902_v0 }
 0x123   : > { %3391 = vmatmul.mubr.msk.f32.vlgmr.msra.gmra.mrb[0].mxu0 %vm281_vm3, %v1397_v47  ;;  %v1725_v57 = vpop.permute.xlu0 %1724  ;;  %3528 = vmatprep.subr.mxu1 %v3902_v0  ;;  %v3184_v47 = vsub.s32 1, %v3179_v43 }
 0x124   : > { %3395 = vmatpush1.msk.msra.mxu0 %vm284_vm1, %v1568_v55  ;;  %1642 = vmatprep.mubr.f32.mxu0 %v3902_v0 }
 0x125   : > { %3399 = vmatprep.subr.msk.mxu0 %vm284_vm1, %v4224_v6  ;;  %v3185_v51 = vrot.slane %v263_v45, %v3184_v47 }
 0x126   : > { %v1884_v58 = vpop.permute.xlu1 %1883 }
 0x127   : > { %v1888_v59 = vpop.permute.xlu0 %1887  ;;  %v1889_v2 = vsel %vm278_vm2, %v1884_v58, %v1886_v56 }
 0x128   : > { %v1890_v61 = vsel %vm278_vm2, %v1886_v56, %v1888_v59 }
 0x129   : > { %3526 = vmatmul.mubr.msk.f32.vlgmr.msra.gmra.mrb[0].mxu1 %vm281_vm3, %v1560_v53 }
 0x12a   : > { %v2048_v60 = vpop.permute.xlu1 %2047  ;;  %3529 = vmatpush3.msk.msra.mxu1 %vm284_vm1, %v4231_v7  ;;  %3530 = vmatprep.mubr.msk.f32.mxu1 %vm3903_vm0, %v3902_v0 }
 0x12b   : > { %3396 = vmatmul.mubr.msk.f32.vlgmr.msra.gmra.mrb[0].mxu0 %vm281_vm3, %v1560_v53  ;;  %3533 = vmatprep.subr.mxu1 %v3902_v0  ;;  %v1882_v62 = vpop.permute.xlu0 %1881 }
 0x12c   : > { %3400 = vmatpush1.msk.msra.mxu0 %vm284_vm1, %v4217_v5  ;;  %1801 = vmatprep.mubr.f32.mxu0 %v3902_v0 }
 0x12d   : > { %3404 = vmatprep.subr.msk.mxu0 %vm284_vm1, %v1890_v61 }
 0x12e   : > { %v2046_v63 = vpop.permute.xlu1 %2045 }
 0x12f   : > { %v2050_v1 = vpop.permute.xlu0 %2049  ;;  %v2051_v8 = vsel %vm589_vm4, %v2046_v63, %v2048_v60 }
 0x130   : > { %v2052_v4 = vsel %vm589_vm4, %v2048_v60, %v2050_v1 }
 0x131   : > { %3531 = vmatmul.mubr.msk.f32.vlgmr.msra.gmra.mrb[0].mxu1 %vm281_vm3, %v1725_v57 }
 0x132   : > { %v2210_v3 = vpop.permute.xlu1 %2209  ;;  %3534 = vmatpush3.msk.msra.mxu1 %vm284_vm1, %v1888_v59  ;;  %3535 = vmatprep.mubr.msk.f32.mxu1 %vm3903_vm0, %v3902_v0 }
 0x133   : > { %3401 = vmatmul.mubr.msk.f32.vlgmr.msra.gmra.mrb[0].mxu0 %vm281_vm3, %v1725_v57  ;;  %3538 = vmatprep.subr.mxu1 %v3902_v0  ;;  %v2044_v5 = vpop.permute.xlu0 %2043 }
 0x134   : > { %3405 = vmatpush1.msk.msra.mxu0 %vm284_vm1, %v1889_v2  ;;  %1963 = vmatprep.mubr.f32.mxu0 %v3902_v0 }
 0x135   : > { %3409 = vmatprep.subr.msk.mxu0 %vm284_vm1, %v2052_v4 }
 0x136   : > { %v2208_v6 = vpop.permute.xlu1 %2207 }
 0x137   : > { %v2212_v7 = vpop.permute.xlu0 %2211  ;;  %v2213_v14 = vsel %vm752_vm5, %v2208_v6, %v2210_v3 }
 0x138   : > { %v2214_v10 = vsel %vm752_vm5, %v2210_v3, %v2212_v7 }
 0x139   : > { %3536 = vmatmul.mubr.msk.f32.vlgmr.msra.gmra.mrb[0].mxu1 %vm281_vm3, %v1882_v62 }
 0x13a   : > { %v2372_v9 = vpop.permute.xlu1 %2371  ;;  %3539 = vmatpush3.msk.msra.mxu1 %vm284_vm1, %v2050_v1  ;;  %3540 = vmatprep.mubr.msk.f32.mxu1 %vm3903_vm0, %v3902_v0 }
 0x13b   : > { %3406 = vmatmul.mubr.msk.f32.vlgmr.msra.gmra.mrb[0].mxu0 %vm281_vm3, %v1882_v62  ;;  %3543 = vmatprep.subr.mxu1 %v3902_v0  ;;  %v2206_v11 = vpop.permute.xlu0 %2205 }
 0x13c   : > { %3410 = vmatpush1.msk.msra.mxu0 %vm284_vm1, %v2051_v8  ;;  %2125 = vmatprep.mubr.f32.mxu0 %v3902_v0 }
 0x13d   : > { %3414 = vmatprep.subr.msk.mxu0 %vm284_vm1, %v2214_v10 }
 0x13e   : > { %v2370_v12 = vpop.permute.xlu1 %2369 }
 0x13f   : > { %v2374_v13 = vpop.permute.xlu0 %2373  ;;  %v2375_v20 = vsel %vm915_vm6, %v2370_v12, %v2372_v9 }
 0x140   : > { %v2376_v16 = vsel %vm915_vm6, %v2372_v9, %v2374_v13 }
 0x141   : > { %3541 = vmatmul.mubr.msk.f32.vlgmr.msra.gmra.mrb[0].mxu1 %vm281_vm3, %v2044_v5 }
 0x142   : > { %v2534_v15 = vpop.permute.xlu1 %2533  ;;  %3544 = vmatpush3.msk.msra.mxu1 %vm284_vm1, %v2212_v7  ;;  %3545 = vmatprep.mubr.msk.f32.mxu1 %vm3903_vm0, %v3902_v0 }
 0x143   : > { %3411 = vmatmul.mubr.msk.f32.vlgmr.msra.gmra.mrb[0].mxu0 %vm281_vm3, %v2044_v5  ;;  %3548 = vmatprep.subr.mxu1 %v3902_v0  ;;  %v2368_v17 = vpop.permute.xlu0 %2367 }
 0x144   : > { %3415 = vmatpush1.msk.msra.mxu0 %vm284_vm1, %v2213_v14  ;;  %2287 = vmatprep.mubr.f32.mxu0 %v3902_v0 }
 0x145   : > { %3419 = vmatprep.subr.msk.mxu0 %vm284_vm1, %v2376_v16 }
 0x146   : > { %v2532_v18 = vpop.permute.xlu1 %2531 }
 0x147   : > { %v2536_v19 = vpop.permute.xlu0 %2535  ;;  %v2537_v26 = vsel %vm1078_vm7, %v2532_v18, %v2534_v15 }
 0x148   : > { %v2538_v22 = vsel %vm1078_vm7, %v2534_v15, %v2536_v19 }
 0x149   : > { %3546 = vmatmul.mubr.msk.f32.vlgmr.msra.gmra.mrb[0].mxu1 %vm281_vm3, %v2206_v11 }
 0x14a   : > { %v2696_v21 = vpop.permute.xlu1 %2695  ;;  %3549 = vmatpush3.msk.msra.mxu1 %vm284_vm1, %v2374_v13  ;;  %3550 = vmatprep.mubr.msk.f32.mxu1 %vm3903_vm0, %v3902_v0 }
 0x14b   : > { %3416 = vmatmul.mubr.msk.f32.vlgmr.msra.gmra.mrb[0].mxu0 %vm281_vm3, %v2206_v11  ;;  %3553 = vmatprep.subr.mxu1 %v3902_v0  ;;  %v2530_v23 = vpop.permute.xlu0 %2529 }
 0x14c   : > { %3420 = vmatpush1.msk.msra.mxu0 %vm284_vm1, %v2375_v20  ;;  %2449 = vmatprep.mubr.f32.mxu0 %v3902_v0 }
 0x14d   : > { %3424 = vmatprep.subr.msk.mxu0 %vm284_vm1, %v2538_v22 }
 0x14e   : > { %v2694_v24 = vpop.permute.xlu1 %2693 }
 0x14f   : > { %v2698_v25 = vpop.permute.xlu0 %2697  ;;  %v2699_v31 = vsel %vm1241_vm8, %v2694_v24, %v2696_v21 }
 0x150   : > { %v2700_v27 = vsel %vm1241_vm8, %v2696_v21, %v2698_v25 }
 0x151   : > { %3551 = vmatmul.mubr.msk.f32.vlgmr.msra.gmra.mrb[0].mxu1 %vm281_vm3, %v2368_v17 }
 0x152   : > { %3554 = vmatpush3.msk.msra.mxu1 %vm284_vm1, %v2536_v19  ;;  %3555 = vmatprep.mubr.msk.f32.mxu1 %vm3903_vm0, %v3902_v0  ;;  %v2858_v29 = vpop.permute.xlu1 %2857 }
 0x153   : > { %3421 = vmatmul.mubr.msk.f32.vlgmr.msra.gmra.mrb[0].mxu0 %vm281_vm3, %v2368_v17  ;;  %3558 = vmatprep.subr.mxu1 %v3902_v0  ;;  %v2692_v28 = vpop.permute.xlu0 %2691 }
 0x154   : > { %3425 = vmatpush1.msk.msra.mxu0 %vm284_vm1, %v2537_v26  ;;  %2611 = vmatprep.mubr.f32.mxu0 %v3902_v0 }
 0x155   : > { %3429 = vmatprep.subr.msk.mxu0 %vm284_vm1, %v2700_v27 }
 0x156   : > { %v2856_v33 = vpop.permute.xlu1 %2855 }
 0x157   : > { %v2860_v30 = vpop.permute.xlu0 %2859  ;;  %v2861_v36 = vsel %vm1404_vm9, %v2856_v33, %v2858_v29 }
 0x158   : > { %v2862_v32 = vsel %vm1404_vm9, %v2858_v29, %v2860_v30 }
 0x159   : > { %3556 = vmatmul.mubr.msk.f32.vlgmr.msra.gmra.mrb[0].mxu1 %vm281_vm3, %v2530_v23 }
 0x15a   : > { %3559 = vmatpush3.msk.msra.mxu1 %vm284_vm1, %v2698_v25  ;;  %3560 = vmatprep.mubr.msk.f32.mxu1 %vm3903_vm0, %v3902_v0  ;;  %v3020_v35 = vpop.permute.xlu1 %3019 }
 0x15b   : > { %3426 = vmatmul.mubr.msk.f32.vlgmr.msra.gmra.mrb[0].mxu0 %vm281_vm3, %v2530_v23  ;;  %3563 = vmatprep.subr.mxu1 %v3902_v0 }
 0x15c   : > { %3430 = vmatpush1.msk.msra.mxu0 %vm284_vm1, %v2699_v31  ;;  %2773 = vmatprep.mubr.f32.mxu0 %v3902_v0 }
 0x15d   : > { %3434 = vmatprep.subr.msk.mxu0 %vm284_vm1, %v2862_v32 }
 0x15f   : > { %v2854_v34 = vpop.permute.xlu0 %2853 }
 0x161   : > { %3561 = vmatmul.mubr.msk.f32.vlgmr.msra.gmra.mrb[0].mxu1 %vm281_vm3, %v2692_v28  ;;  %v3018_v39 = vpop.permute.xlu1 %3017 }
 0x162   : > { %3564 = vmatpush3.msk.msra.mxu1 %vm284_vm1, %v2860_v30  ;;  %3565 = vmatprep.mubr.msk.f32.mxu1 %vm3903_vm0, %v3902_v0  ;;  %v3023_v40 = vsel %vm1567_vm10, %v3018_v39, %v3020_v35 }
 0x163   : > { %3431 = vmatmul.mubr.msk.f32.vlgmr.msra.gmra.mrb[0].mxu0 %vm281_vm3, %v2692_v28  ;;  %v3022_v37 = vpop.permute.xlu0 %3021  ;;  %3568 = vmatprep.subr.mxu1 %v3902_v0 }
 0x164   : > { %3435 = vmatpush1.msk.msra.mxu0 %vm284_vm1, %v2861_v36  ;;  %v3024_v38 = vsel %vm1567_vm10, %v3020_v35, %v3022_v37  ;;  %2935 = vmatprep.mubr.f32.mxu0 %v3902_v0 }
 0x165   : > { %3439 = vmatprep.subr.msk.mxu0 %vm284_vm1, %v3024_v38 }
 0x167   : > { %v3016_v41 = vpop.permute.xlu0 %3015 }
 0x169   : > { %3566 = vmatmul.mubr.msk.f32.vlgmr.msra.gmra.mrb[0].mxu1 %vm281_vm3, %v2854_v34 }
 0x16a   : > { %3569 = vmatpush3.msk.msra.mxu1 %vm284_vm1, %v3022_v37  ;;  %3570 = vmatprep.mubr.msk.f32.mxu1 %vm3903_vm0, %v3902_v0 }
 0x16b   : > { %3436 = vmatmul.mubr.msk.f32.vlgmr.msra.gmra.mrb[0].mxu0 %vm281_vm3, %v2854_v34 }
 0x16c   : > { %3440 = vmatpush1.msk.msra.mxu0 %vm284_vm1, %v3023_v40  ;;  %3097 = vmatprep.mubr.f32.mxu0 %v3902_v0 }
 0x171   : > { %3571 = vmatmul.mubr.msk.f32.vlgmr.msra.gmra.mrb[0].mxu1 %vm281_vm3, %v3016_v41 }
 0x173   : > { %3441 = vmatmul.mubr.msk.f32.vlgmr.msra.gmra.mrb[0].mxu0 %vm281_vm3, %v3016_v41 }
 0x244   : > { %v3170_v50 = vpop.f32.mrb[0].mxu1 }
 0x245   : > { %v3195_v52 = vmul.f32 %v3189_v48, %v3170_v50  ;;  %v3572_v0 = vpop.f32.mrb[1].mxu1 }
 0x246   : > { %v3099_v53 = vpop.f32.mrb[0].mxu0 }
 0x247   : > { %v3193_v54 = vmul.f32 %v3181_v49, %v3099_v53  ;;  %v3101_v55 = vpop.f32.mrb[1].mxu0  ;;  %v3204_v57 = vmul.f32 %v3195_v52, %v3170_v50  ;;  %v3198_v61 = vsel %vm3197_vm11, %v3195_v52, 0.0 }
 0x248   : > { %v3194_v56 = vmul.f32 %v3185_v51, %v3101_v55 }
 0x249   : > { %v3202_v58 = vmul.f32 %v3193_v54, %v3099_v53  ;;  %v3206_v1 = vsel %vm3197_vm11, %v3204_v57, 0.0 }
 0x24a   : > { %v3203_v59 = vmul.f32 %v3194_v56, %v3101_v55  ;;  %v3196_v60 = vadd.f32 %v3194_v56, %v3193_v54 }
 0x24c   : > { %v3199_v62 = vadd.f32 %v3198_v61, %v3196_v60  ;;  %v3205_v63 = vadd.f32 %v3203_v59, %v3202_v58 }
 0x24e   : > { %3200 = vadd.xlane.f32.xlu1 %v3199_v62  ;;  %v3207_v2 = vadd.f32 %v3206_v1, %v3205_v63 }
 0x250   : > { %3208 = vadd.xlane.f32.xlu0 %v3207_v2 }
 0x2db   : > { %v3201_v3 = vpop.xlane.xlu1 %3200 }
 0x2dc   : > { %v3210_v4 = vmul.f32 0.00390625, %v3201_v3 }
 0x2dd   : > { %v3209_v5 = vpop.xlane.xlu0 %3208 }
 0x2de   : > { %v3211_v6 = vmul.f32 0.00390625, %v3209_v5  ;;  %v3212_v7 = vmul.f32 %v3210_v4, %v3210_v4  ;;  %v3215_v11 = vsub.f32 %v3099_v53, %v3210_v4  ;;  %v3216_v12 = vsub.f32 %v3101_v55, %v3210_v4 }
 0x2df   : > { %v3217_v13 = vsub.f32 %v3170_v50, %v3210_v4 }
 0x2e0   : > { %v3213_v8 = vsub.f32 %v3211_v6, %v3212_v7 }
 0x2e2   : > { %v3214_v9 = vmax.f32 %v3213_v8, 0.0 }
 0x2e4   : > { %v3218_v10 = vadd.f32 1e-05, %v3214_v9 }
 0x2e6   : > { %3737 = vrsqrt.f32 %v3218_v10 }
 0x2f0   : > { %v3738_v14 = vpop.eup %3737 }
 0x2f1   : > { %v3220_v15 = vmul.f32 %v3738_v14, %v3215_v11  ;;  %v3221_v16 = vmul.f32 %v3738_v14, %v3216_v12  ;;  %v3222_v17 = vmul.f32 %v3738_v14, %v3217_v13 }
 0x2f3   : > { %v3223_v18 = vmax.f32 %v3220_v15, 0.0  ;;  %v3224_v19 = vmax.f32 %v3221_v16, 0.0  ;;  %v3225_v20 = vmax.f32 %v3222_v17, 0.0 }
 0x2f5   : > { %3226 = vst [vmem:[%s261_s14] sm:$0xff] %v3223_v18  ;;  %3227 = vst [vmem:[%s261_s14 + $0x8] sm:$0xff] %v3224_v19 }
 0x2f6   : > { %3228 = vst.msk [vmem:[%s261_s14 + $0x10] sm:$0xff] %vm3197_vm11, %v3225_v20 }
 0x2f7   : > { %3840 = shalt.err (!%p3837_p5)
}
 0x2f8   : > { %s3841_s13 = scalar_lea.hbm %s4497_s23, 384  ;;  %s3845_s10 = scalar_lea.hbm %s4546_s4, 768 }
 0x2f9   : > { %p3842_p11 = scmp.ne.s32.totalorder %s4497_s23, %s3841_s13  ;;  %p3846_p7 = scmp.lt.u32.totalorder %s4497_s23, %s4546_s4 }
 0x2fa   : > { %p3847_p10 = scmp.lt.u32.totalorder %s3845_s10, %s3841_s13  ;;  %p3849_p4 = scmp.lt.u32.totalorder %s3841_s13, %s4497_s23 }
 0x2fb   : > { %p3843_p9 = pnand %p3842_p11, %p4561_p12 }
 0x2fc   : > { %p3848_p13 = por %p3847_p10, %p3846_p7 }
 0x2fd   : > { %p3844_p8 = pneg %p3843_p9 }
 0x2fe   : > { %p3850_p2 = por %p3849_p4, %p3848_p13 }
 0x300   : > { %p3851_p6 = pnand %p3850_p2, %p3844_p8 }
 0x302   : > { %3854 = shalt.err (!%p3851_p6)
}
 0x303   : > { %3656 = dma.vmem_to_hbm [thread:$0]  (%p4561_p12), %s4499_s27, 384, %s4497_s23, %s3230_s24  }
 0x304 PF: > { %s3256_s7 = sand.u32 1, %s3885_s15   ;;  %p4562_p0 = scmp.ne.s32.totalorder %s4554_s5, 0 }
 0x305   : > { %p4563_p3 = scmp.ge.s32.totalorder %s3897_s18, 2  ;;  %s3257_s12 = scalar_lea.sflag [#allocation4], %s3256_s7 }
 0x307   : > { %p3670_p1 = pnand %p4563_p3, %p4562_p0 }
 0x309   : > { %3880 = dma.done.wait (!%p3670_p1), %s3257_s12, 384  }
 0x30a   : > { %3882 = vsyncadd (!%p3670_p1), %s3257_s12, 4294966912  ;;  %p18_p5 = scmp.ge.s32.totalorder %s3974_s19, 4   ;;  %s4564_s15 = smov %s3889_s16 }
 0x30b   : > { %s4565_s16 = smov %s3893_s17  ;;  %s4566_s17 = smov %s3985_s22 }
 0x30c   : > { %s4567_s18 = smov %s3974_s19  ;;  %20 = sbr.rel (!%p18_p5) target bundleno = 6 (0x6), region = 97 }
 0x313   :  { %3262 = vsyncpa [#allocation3], 1 }
 0x314   :  { %3264 = vsyncpa [#allocation3 + $0x1], 1 }
 0x315   :  { %3265 = vsyncpa [#allocation6], 1 }
 0x316   :  { %3267 = vsyncpa [#allocation6 + $0x1], 1 }
 0x317   :  { %3268 = vsyncpa [#allocation4], 1 }
 0x318   :  { %3270 = vsyncpa [#allocation4 + $0x1], 1 }

</bundles_post_ra>
